<compile_context>
chip_gen: v7x
topology: tpu7x:2x2x1
jax: 0.10.0
libtpu: 0.0.40
codegen_flags: <defaults>
</compile_context>

<pallas_src>
import functools

import jax
import jax.numpy as jnp
from jax.experimental import pallas as pl
from jax.experimental.pallas import tpu as pltpu

HIDDEN = 32
NUM_HEADS = 4
HEAD_DIM = HIDDEN // NUM_HEADS
B = 2
S = 8


# ---------------------------------------------------------------------------
# Fused kernel: [Wqkv | Wo] projection + slab-wide RoPE + batched masked softmax
# ---------------------------------------------------------------------------
def _fused_mhsa_kernel(x_ref, w_ref, b_ref, mask_ref, tcos_ref, tsa_ref, tsb_ref,
                       xout_ref, attn_ref, *, batch, seq, hidden, nheads, hdim):
    """Single-step fused kernel.

    x_ref    : (batch, seq, hidden)
    w_ref    : (hidden, 4*hidden)     columns = [ q(scaled) | k | v(dead) | Wo ]
    b_ref    : (1, 4*hidden)
    mask_ref : (batch, seq, seq)      1 = keep, 0 = masked
    tcos_ref : (batch*seq, 2*hidden)  RoPE cos table tiled over the q|k slab
    tsa_ref  : (batch*seq, 2*hidden)  -sin on first-half lanes, 0 elsewhere
    tsb_ref  : (batch*seq, 2*hidden)  +sin on second-half lanes, 0 elsewhere
    xout_ref : (batch, seq, hidden)   = Wo(x) + b_o   (what the reference returns)
    attn_ref : (batch, nheads, seq, seq)
    """
    half = hdim // 2
    rows = batch * seq

    x = x_ref[...].reshape(rows, hidden).astype(jnp.float32)

    # One lane-dense, 128-wide MXU pass covers q, k, (dead) v and Wo at once.
    proj = jnp.dot(x, w_ref[...], preferred_element_type=jnp.float32) + b_ref[...]

    # Wo(x) path -- the tensor the reference actually returns.
    xout_ref[...] = proj[:, 3 * hidden:].reshape(batch, seq, hidden).astype(
        xout_ref.dtype)

    # ---- RoPE, vectorized over the whole (rows, 2*hidden) q|k slab ----------
    # Within every 8-lane head block [x1(0:half) | x2(half:)] we need
    #   rot[o]      = x1[o]*cos[o] - x2[o]*sin[o]        (o < half)
    #   rot[half+o] = x2[o]*cos[o] + x1[o]*sin[o]
    # `up` holds qk shifted so lane l sees qk[l+half]; `dn` sees qk[l-half].
    # The sign / zero placement lives in the precomputed tsa / tsb tables, so
    # wrap-around lanes and cross-block spill never contribute.
    qk = proj[:, :2 * hidden]                                       # (rows, 2H)
    up = jnp.concatenate([qk[:, half:], qk[:, :half]], axis=1)      # qk[l+half]
    dn = jnp.concatenate([qk[:, -half:], qk[:, :-half]], axis=1)    # qk[l-half]
    qk_rot = qk * tcos_ref[...] + up * tsa_ref[...] + dn * tsb_ref[...]

    # ---- one batched score contraction over (batch*nheads, seq, hdim) -------
    # Heads live on the lane axis after the projection; moving them into the
    # leading (batch) axis is done with 8-aligned width-8 slices + tile-level
    # stacks (no cross-tile reshapes), then a single batched einsum.
    q_hm = jnp.stack(
        [qk_rot[:, h * hdim:(h + 1) * hdim].reshape(batch, seq, hdim)
         for h in range(nheads)], axis=1).reshape(batch * nheads, seq, hdim)
    k_hm = jnp.stack(
        [qk_rot[:, hidden + h * hdim: hidden + (h + 1) * hdim]
         .reshape(batch, seq, hdim)
         for h in range(nheads)], axis=1).reshape(batch * nheads, seq, hdim)

    scores = jnp.einsum('bqd,bkd->bqk', q_hm, k_hm,
                        preferred_element_type=jnp.float32)          # (B*NH,S,S)
    scores = scores.reshape(batch, nheads, seq, seq)

    # masked_fill(mask == 0, -1e6) applied ONCE for all heads.
    keep = (mask_ref[...] != 0)[:, None, :, :]
    scores = jnp.where(keep, scores, jnp.float32(-1000000.0))

    # Softmax over the key axis (dropout = identity in eval mode).
    scores = scores - jnp.max(scores, axis=-1, keepdims=True)
    p = jnp.exp(scores)
    inv = pl.reciprocal(jnp.sum(p, axis=-1, keepdims=True), approx=False)
    attn_ref[...] = (p * inv).astype(attn_ref.dtype)


# ---------------------------------------------------------------------------
# Wrapper (parameter setup, RoPE tables, single pallas_call)
# ---------------------------------------------------------------------------
class MultiHeadSelfAttentionPallas:
    def __init__(self, hidden_size, num_heads, key, use_RoPE=True):
        self.hidden_size = hidden_size
        self.num_heads = num_heads
        self.head_dim = hidden_size // num_heads
        self.temperature = hidden_size ** 0.5
        self.use_RoPE = use_RoPE

        k1, k2, k3, k4 = jax.random.split(key, 4)
        bound = 1.0 / (hidden_size ** 0.5)  # torch nn.Linear default init range
        Wqkv_w = jax.random.uniform(k1, (3 * hidden_size, hidden_size),
                                    jnp.float32, -bound, bound)
        Wqkv_b = jax.random.uniform(k2, (3 * hidden_size,),
                                    jnp.float32, -bound, bound)
        Wo_w = jax.random.uniform(k3, (hidden_size, hidden_size),
                                  jnp.float32, -bound, bound)
        Wo_b = jax.random.uniform(k4, (hidden_size,),
                                  jnp.float32, -bound, bound)

        H = hidden_size
        inv_temp = 1.0 / self.temperature
        # Fused [q|k|v|o] projection (torch Linear convention: x @ W^T + b),
        # 1/temperature folded into the q columns.  Kept exactly 4H = 128 wide
        # (dead v columns included) so the projection stays lane-dense.
        self.W_fused = jnp.concatenate(
            [Wqkv_w[:H].T * inv_temp,        # q
             Wqkv_w[H:2 * H].T,              # k
             Wqkv_w[2 * H:].T,               # v (never read: output discarded)
             Wo_w.T],                        # Wo
            axis=1)                          # (H, 4H)
        self.b_fused = jnp.concatenate(
            [Wqkv_b[:H] * inv_temp, Wqkv_b[H:], Wo_b]).reshape(1, 4 * H)
        # NOTE: RMSNorm/LayerNorm params exist in the torch module but are
        # never used in its forward, so they are omitted here.

    def _rope_tables(self, seq, base=10000.0):
        # TODO(synk): Rotary_Positional_Embeedding source was not provided; a
        # standard rotate-half RoPE over head_dim (base=10000) is the stand-in.
        half = self.head_dim // 2
        inv_freq = 1.0 / (base ** (jnp.arange(half, dtype=jnp.float32) / half))
        pos = jnp.arange(seq, dtype=jnp.float32)
        ang = pos[:, None] * inv_freq[None, :]                   # (seq, half)
        return jnp.cos(ang), jnp.sin(ang)

    def __call__(self, x, attention_mask):
        B_, S_, H_ = x.shape
        NH, D = self.num_heads, self.head_dim
        half = D // 2

        if self.use_RoPE:
            cos, sin = self._rope_tables(S_)
        else:
            cos = jnp.ones((S_, half), jnp.float32)
            sin = jnp.zeros((S_, half), jnp.float32)

        # Tiled RoPE tables over the full q|k slab: per 8-lane head block the
        # lane pattern is [cos|cos], [-sin|0], [0|+sin]; tile over the 2*NH
        # head blocks (q heads then k heads) and over batch rows.
        zero = jnp.zeros_like(sin)
        blk_cos = jnp.concatenate([cos, cos], axis=1)            # (S, D)
        blk_sa = jnp.concatenate([-sin, zero], axis=1)           # (S, D)
        blk_sb = jnp.concatenate([zero, sin], axis=1)            # (S, D)
        reps = (B_, 2 * NH)
        tcos = jnp.tile(blk_cos, reps)                           # (B*S, 2H)
        tsa = jnp.tile(blk_sa, reps)
        tsb = jnp.tile(blk_sb, reps)

        # (B, 1, S, S) -> (B, S, S); broadcast over heads happens in-kernel.
        mask3 = attention_mask.reshape(B_, S_, S_)

        kernel = functools.partial(_fused_mhsa_kernel, batch=B_, seq=S_,
                                   hidden=H_, nheads=NH, hdim=D)
        x_out, attn = pl.pallas_call(
            kernel,
            out_shape=(
                jax.ShapeDtypeStruct((B_, S_, H_), x.dtype),
                jax.ShapeDtypeStruct((B_, NH, S_, S_), jnp.float32),
            ),
            grid=(1,),
            in_specs=[
                pl.BlockSpec((B_, S_, H_), lambda i: (0, 0, 0)),
                pl.BlockSpec((H_, 4 * H_), lambda i: (0, 0)),
                pl.BlockSpec((1, 4 * H_), lambda i: (0, 0)),
                pl.BlockSpec((B_, S_, S_), lambda i: (0, 0, 0)),
                pl.BlockSpec((B_ * S_, 2 * H_), lambda i: (0, 0)),
                pl.BlockSpec((B_ * S_, 2 * H_), lambda i: (0, 0)),
                pl.BlockSpec((B_ * S_, 2 * H_), lambda i: (0, 0)),
            ],
            out_specs=(
                pl.BlockSpec((B_, S_, H_), lambda i: (0, 0, 0)),
                pl.BlockSpec((B_, NH, S_, S_), lambda i: (0, 0, 0, 0)),
            ),
            compiler_params=pltpu.CompilerParams(
                dimension_semantics=("arbitrary",)),
        )(x, self.W_fused, self.b_fused, mask3, tcos, tsa, tsb)

        return x_out, attn


if __name__ == "__main__":
    key = jax.random.PRNGKey(0)
    kp, kx = jax.random.split(key)

    mha = MultiHeadSelfAttentionPallas(HIDDEN, NUM_HEADS, kp, use_RoPE=True)

    x = jax.random.normal(kx, (B, S, HIDDEN), jnp.float32)
    # causal attention mask: (B, 1, S, S), 1 = keep, 0 = masked
    mask = jnp.broadcast_to(
        jnp.tril(jnp.ones((S, S), jnp.float32))[None, None], (B, 1, S, S))

    x_out, attn = mha(x, mask)
    jax.block_until_ready((x_out, attn))

    assert x_out.shape == (B, S, HIDDEN)
    assert attn.shape == (B, NUM_HEADS, S, S)
    assert bool(jnp.isfinite(x_out).all()) and bool(jnp.isfinite(attn).all())
    # softmax rows must sum to 1 (causal mask keeps >= 1 entry per row)
    assert bool(jnp.allclose(jnp.sum(attn, axis=-1), 1.0, atol=1e-4))
    print("KERNEL_OK")
</pallas_src>

<mosaic_0001>
module attributes {stable_mosaic.version = 11 : i64} {
  func.func @_fused_mhsa_kernel(%arg0: i32, %arg1: memref<2x8x32xf32, #tpu.memory_space<vmem>>, %arg2: memref<32x128xf32, #tpu.memory_space<vmem>>, %arg3: memref<1x128xf32, #tpu.memory_space<vmem>>, %arg4: memref<2x8x8xf32, #tpu.memory_space<vmem>>, %arg5: memref<16x64xf32, #tpu.memory_space<vmem>>, %arg6: memref<16x64xf32, #tpu.memory_space<vmem>>, %arg7: memref<16x64xf32, #tpu.memory_space<vmem>>, %arg8: memref<2x8x32xf32, #tpu.memory_space<vmem>>, %arg9: memref<2x4x8x8xf32, #tpu.memory_space<vmem>>) attributes {dimension_semantics = [#tpu.dimension_semantics<arbitrary>], iteration_bounds = array<i64: 1>, scalar_prefetch = 0 : i64, scratch_operands = 0 : i64, tpu.core_type = #tpu.core_type<tc>, window_params = [{pipeline_mode = #tpu.pipeline_mode<synchronous>, transform_indices = @transform_0, window_bounds = array<i64: 2, 8, 32>}, {pipeline_mode = #tpu.pipeline_mode<synchronous>, transform_indices = @transform_1, window_bounds = array<i64: 32, 128>}, {pipeline_mode = #tpu.pipeline_mode<synchronous>, transform_indices = @transform_2, window_bounds = array<i64: 1, 128>}, {pipeline_mode = #tpu.pipeline_mode<synchronous>, transform_indices = @transform_3, window_bounds = array<i64: 2, 8, 8>}, {pipeline_mode = #tpu.pipeline_mode<synchronous>, transform_indices = @transform_4, window_bounds = array<i64: 16, 64>}, {pipeline_mode = #tpu.pipeline_mode<synchronous>, transform_indices = @transform_5, window_bounds = array<i64: 16, 64>}, {pipeline_mode = #tpu.pipeline_mode<synchronous>, transform_indices = @transform_6, window_bounds = array<i64: 16, 64>}, {pipeline_mode = #tpu.pipeline_mode<synchronous>, transform_indices = @transform_7, window_bounds = array<i64: 2, 8, 32>}, {pipeline_mode = #tpu.pipeline_mode<synchronous>, transform_indices = @transform_8, window_bounds = array<i64: 2, 4, 8, 8>}]} {
    %c0 = arith.constant 0 : index
    %c0_0 = arith.constant 0 : index
    %c0_1 = arith.constant 0 : index
    %0 = vector.load %arg1[%c0, %c0_0, %c0_1] : memref<2x8x32xf32, #tpu.memory_space<vmem>>, vector<2x8x32xf32>
    %1 = vector.shape_cast %0 : vector<2x8x32xf32> to vector<16x32xf32>
    %c0_2 = arith.constant 0 : index
    %c0_3 = arith.constant 0 : index
    %2 = vector.load %arg2[%c0_2, %c0_3] : memref<32x128xf32, #tpu.memory_space<vmem>>, vector<32x128xf32>
    %cst = arith.constant dense<0.000000e+00> : vector<16x128xf32>
    %3 = tpu.matmul %1, %2, %cst {dimension_numbers = #tpu.dot_dimension_numbers<[1], [0], [0], [1], [0, 0, 1, 1], [], []>} : vector<16x32xf32>, vector<32x128xf32>, vector<16x128xf32> -> vector<16x128xf32>
    %c0_4 = arith.constant 0 : index
    %c0_5 = arith.constant 0 : index
    %4 = vector.load %arg3[%c0_4, %c0_5] : memref<1x128xf32, #tpu.memory_space<vmem>>, vector<1x128xf32>
    %5 = vector.broadcast %4 : vector<1x128xf32> to vector<16x128xf32>
    %6 = arith.addf %3, %5 : vector<16x128xf32>
    %7 = vector.extract_strided_slice %6 {offsets = [0, 96], sizes = [16, 32], strides = [1, 1]} : vector<16x128xf32> to vector<16x32xf32>
    %8 = vector.shape_cast %7 : vector<16x32xf32> to vector<2x8x32xf32>
    %c0_6 = arith.constant 0 : index
    %c0_7 = arith.constant 0 : index
    %c0_8 = arith.constant 0 : index
    %9 = vector.load %arg8[%c0_6, %c0_7, %c0_8] : memref<2x8x32xf32, #tpu.memory_space<vmem>>, vector<2x8x32xf32>
    tpu.vector_store %arg8[%c0_6, %c0_7, %c0_8], %8 {strides = array<i32>} : memref<2x8x32xf32, #tpu.memory_space<vmem>>, vector<2x8x32xf32>,
    %10 = vector.extract_strided_slice %6 {offsets = [0, 0], sizes = [16, 64], strides = [1, 1]} : vector<16x128xf32> to vector<16x64xf32>
    %11 = vector.extract_strided_slice %10 {offsets = [0, 4], sizes = [16, 60], strides = [1, 1]} : vector<16x64xf32> to vector<16x60xf32>
    %12 = vector.extract_strided_slice %10 {offsets = [0, 0], sizes = [16, 4], strides = [1, 1]} : vector<16x64xf32> to vector<16x4xf32>
    %13 = tpu.concatenate %11, %12 in 1 : vector<16x60xf32>, vector<16x4xf32> -> vector<16x64xf32>
    %14 = vector.extract_strided_slice %10 {offsets = [0, 60], sizes = [16, 4], strides = [1, 1]} : vector<16x64xf32> to vector<16x4xf32>
    %15 = vector.extract_strided_slice %10 {offsets = [0, 0], sizes = [16, 60], strides = [1, 1]} : vector<16x64xf32> to vector<16x60xf32>
    %16 = tpu.concatenate %14, %15 in 1 : vector<16x4xf32>, vector<16x60xf32> -> vector<16x64xf32>
    %c0_9 = arith.constant 0 : index
    %c0_10 = arith.constant 0 : index
    %17 = vector.load %arg5[%c0_9, %c0_10] : memref<16x64xf32, #tpu.memory_space<vmem>>, vector<16x64xf32>
    %18 = arith.mulf %10, %17 : vector<16x64xf32>
    %c0_11 = arith.constant 0 : index
    %c0_12 = arith.constant 0 : index
    %19 = vector.load %arg6[%c0_11, %c0_12] : memref<16x64xf32, #tpu.memory_space<vmem>>, vector<16x64xf32>
    %20 = arith.mulf %13, %19 : vector<16x64xf32>
    %21 = arith.addf %18, %20 : vector<16x64xf32>
    %c0_13 = arith.constant 0 : index
    %c0_14 = arith.constant 0 : index
    %22 = vector.load %arg7[%c0_13, %c0_14] : memref<16x64xf32, #tpu.memory_space<vmem>>, vector<16x64xf32>
    %23 = arith.mulf %16, %22 : vector<16x64xf32>
    %24 = arith.addf %21, %23 : vector<16x64xf32>
    %25 = vector.extract_strided_slice %24 {offsets = [0, 0], sizes = [16, 8], strides = [1, 1]} : vector<16x64xf32> to vector<16x8xf32>
    %26 = vector.shape_cast %25 : vector<16x8xf32> to vector<2x8x8xf32>
    %27 = vector.extract_strided_slice %24 {offsets = [0, 8], sizes = [16, 8], strides = [1, 1]} : vector<16x64xf32> to vector<16x8xf32>
    %28 = vector.shape_cast %27 : vector<16x8xf32> to vector<2x8x8xf32>
    %29 = vector.extract_strided_slice %24 {offsets = [0, 16], sizes = [16, 8], strides = [1, 1]} : vector<16x64xf32> to vector<16x8xf32>
    %30 = vector.shape_cast %29 : vector<16x8xf32> to vector<2x8x8xf32>
    %31 = vector.extract_strided_slice %24 {offsets = [0, 24], sizes = [16, 8], strides = [1, 1]} : vector<16x64xf32> to vector<16x8xf32>
    %32 = vector.shape_cast %31 : vector<16x8xf32> to vector<2x8x8xf32>
    %33 = vector.shape_cast %26 : vector<2x8x8xf32> to vector<2x1x8x8xf32>
    %34 = vector.shape_cast %28 : vector<2x8x8xf32> to vector<2x1x8x8xf32>
    %35 = vector.shape_cast %30 : vector<2x8x8xf32> to vector<2x1x8x8xf32>
    %36 = vector.shape_cast %32 : vector<2x8x8xf32> to vector<2x1x8x8xf32>
    %37 = tpu.concatenate %33, %34, %35, %36 in 1 : vector<2x1x8x8xf32>, vector<2x1x8x8xf32>, vector<2x1x8x8xf32>, vector<2x1x8x8xf32> -> vector<2x4x8x8xf32>
    %38 = vector.shape_cast %37 : vector<2x4x8x8xf32> to vector<8x8x8xf32>
    %39 = vector.extract_strided_slice %24 {offsets = [0, 32], sizes = [16, 8], strides = [1, 1]} : vector<16x64xf32> to vector<16x8xf32>
    %40 = vector.shape_cast %39 : vector<16x8xf32> to vector<2x8x8xf32>
    %41 = vector.extract_strided_slice %24 {offsets = [0, 40], sizes = [16, 8], strides = [1, 1]} : vector<16x64xf32> to vector<16x8xf32>
    %42 = vector.shape_cast %41 : vector<16x8xf32> to vector<2x8x8xf32>
    %43 = vector.extract_strided_slice %24 {offsets = [0, 48], sizes = [16, 8], strides = [1, 1]} : vector<16x64xf32> to vector<16x8xf32>
    %44 = vector.shape_cast %43 : vector<16x8xf32> to vector<2x8x8xf32>
    %45 = vector.extract_strided_slice %24 {offsets = [0, 56], sizes = [16, 8], strides = [1, 1]} : vector<16x64xf32> to vector<16x8xf32>
    %46 = vector.shape_cast %45 : vector<16x8xf32> to vector<2x8x8xf32>
    %47 = vector.shape_cast %40 : vector<2x8x8xf32> to vector<2x1x8x8xf32>
    %48 = vector.shape_cast %42 : vector<2x8x8xf32> to vector<2x1x8x8xf32>
    %49 = vector.shape_cast %44 : vector<2x8x8xf32> to vector<2x1x8x8xf32>
    %50 = vector.shape_cast %46 : vector<2x8x8xf32> to vector<2x1x8x8xf32>
    %51 = tpu.concatenate %47, %48, %49, %50 in 1 : vector<2x1x8x8xf32>, vector<2x1x8x8xf32>, vector<2x1x8x8xf32>, vector<2x1x8x8xf32> -> vector<2x4x8x8xf32>
    %52 = vector.shape_cast %51 : vector<2x4x8x8xf32> to vector<8x8x8xf32>
    "tpu.trace_start"() <{level = 10 : i32, message = "bqd,bkd->bqk"}> : () -> ()
    %cst_15 = arith.constant dense<0.000000e+00> : vector<8x8x8xf32>
    %53 = tpu.matmul %38, %52, %cst_15 {dimension_numbers = #tpu.dot_dimension_numbers<[2], [2], [1], [1], [0, 0, 0, 1, 1, 1], [0], [0]>} : vector<8x8x8xf32>, vector<8x8x8xf32>, vector<8x8x8xf32> -> vector<8x8x8xf32>
    "tpu.trace_stop"() : () -> ()
    %54 = vector.shape_cast %53 : vector<8x8x8xf32> to vector<2x4x8x8xf32>
    %c0_16 = arith.constant 0 : index
    %c0_17 = arith.constant 0 : index
    %c0_18 = arith.constant 0 : index
    %55 = vector.load %arg4[%c0_16, %c0_17, %c0_18] : memref<2x8x8xf32, #tpu.memory_space<vmem>>, vector<2x8x8xf32>
    %cst_19 = arith.constant 0.000000e+00 : f32
    %56 = vector.broadcast %cst_19 : f32 to vector<2x8x8xf32>
    %57 = arith.cmpf one, %55, %56 : vector<2x8x8xf32>
    %58 = vector.shape_cast %57 : vector<2x8x8xi1> to vector<2x1x8x8xi1>
    %cst_20 = arith.constant -1.000000e+06 : f32
    %59 = vector.shape_cast %58 : vector<2x1x8x8xi1> to vector<2x1x8x8xi1>
    %60 = vector.broadcast %59 : vector<2x1x8x8xi1> to vector<2x4x8x8xi1>
    %61 = vector.broadcast %cst_20 : f32 to vector<2x4x8x8xf32>
    %62 = arith.select %60, %54, %61 : vector<2x4x8x8xi1>, vector<2x4x8x8xf32>
    %cst_21 = arith.constant dense<0xFF800000> : vector<2x4x8xf32>
    %63 = vector.multi_reduction <maximumf>, %62, %cst_21 [3] : vector<2x4x8x8xf32> to vector<2x4x8xf32>
    %64 = vector.shape_cast %63 : vector<2x4x8xf32> to vector<2x4x8x1xf32>
    %65 = vector.broadcast %64 : vector<2x4x8x1xf32> to vector<2x4x8x8xf32>
    %66 = arith.subf %62, %65 : vector<2x4x8x8xf32>
    %67 = math.exp %66 : vector<2x4x8x8xf32>
    %cst_22 = arith.constant dense<0.000000e+00> : vector<2x4x8xf32>
    %68 = vector.multi_reduction <add>, %67, %cst_22 [3] : vector<2x4x8x8xf32> to vector<2x4x8xf32>
    %69 = vector.shape_cast %68 : vector<2x4x8xf32> to vector<2x4x8x1xf32>
    %70 = tpu.reciprocal %69 : vector<2x4x8x1xf32> -> vector<2x4x8x1xf32>
    %71 = vector.broadcast %70 : vector<2x4x8x1xf32> to vector<2x4x8x8xf32>
    %72 = arith.mulf %67, %71 : vector<2x4x8x8xf32>
    %c0_23 = arith.constant 0 : index
    %c0_24 = arith.constant 0 : index
    %c0_25 = arith.constant 0 : index
    %c0_26 = arith.constant 0 : index
    %73 = vector.load %arg9[%c0_23, %c0_24, %c0_25, %c0_26] : memref<2x4x8x8xf32, #tpu.memory_space<vmem>>, vector<2x4x8x8xf32>
    tpu.vector_store %arg9[%c0_23, %c0_24, %c0_25, %c0_26], %72 {strides = array<i32>} : memref<2x4x8x8xf32, #tpu.memory_space<vmem>>, vector<2x4x8x8xf32>,
    return
  }
  func.func @transform_0(%arg0: i32) -> (i32, i32, i32) {
    %c0_i32 = arith.constant 0 : i32
    %c0_i32_0 = arith.constant 0 : i32
    %c0_i32_1 = arith.constant 0 : i32
    %c0_i32_2 = arith.constant 0 : i32
    return %c0_i32, %c0_i32_0, %c0_i32_1 : i32, i32, i32
  }
  func.func @transform_1(%arg0: i32) -> (i32, i32) {
    %c0_i32 = arith.constant 0 : i32
    %c0_i32_0 = arith.constant 0 : i32
    %c0_i32_1 = arith.constant 0 : i32
    return %c0_i32, %c0_i32_0 : i32, i32
  }
  func.func @transform_2(%arg0: i32) -> (i32, i32) {
    %c0_i32 = arith.constant 0 : i32
    %c0_i32_0 = arith.constant 0 : i32
    %c0_i32_1 = arith.constant 0 : i32
    return %c0_i32, %c0_i32_0 : i32, i32
  }
  func.func @transform_3(%arg0: i32) -> (i32, i32, i32) {
    %c0_i32 = arith.constant 0 : i32
    %c0_i32_0 = arith.constant 0 : i32
    %c0_i32_1 = arith.constant 0 : i32
    %c0_i32_2 = arith.constant 0 : i32
    return %c0_i32, %c0_i32_0, %c0_i32_1 : i32, i32, i32
  }
  func.func @transform_4(%arg0: i32) -> (i32, i32) {
    %c0_i32 = arith.constant 0 : i32
    %c0_i32_0 = arith.constant 0 : i32
    %c0_i32_1 = arith.constant 0 : i32
    return %c0_i32, %c0_i32_0 : i32, i32
  }
  func.func @transform_5(%arg0: i32) -> (i32, i32) {
    %c0_i32 = arith.constant 0 : i32
    %c0_i32_0 = arith.constant 0 : i32
    %c0_i32_1 = arith.constant 0 : i32
    return %c0_i32, %c0_i32_0 : i32, i32
  }
  func.func @transform_6(%arg0: i32) -> (i32, i32) {
    %c0_i32 = arith.constant 0 : i32
    %c0_i32_0 = arith.constant 0 : i32
    %c0_i32_1 = arith.constant 0 : i32
    return %c0_i32, %c0_i32_0 : i32, i32
  }
  func.func @transform_7(%arg0: i32) -> (i32, i32, i32) {
    %c0_i32 = arith.constant 0 : i32
    %c0_i32_0 = arith.constant 0 : i32
    %c0_i32_1 = arith.constant 0 : i32
    %c0_i32_2 = arith.constant 0 : i32
    return %c0_i32, %c0_i32_0, %c0_i32_1 : i32, i32, i32
  }
  func.func @transform_8(%arg0: i32) -> (i32, i32, i32, i32) {
    %c0_i32 = arith.constant 0 : i32
    %c0_i32_0 = arith.constant 0 : i32
    %c0_i32_1 = arith.constant 0 : i32
    %c0_i32_2 = arith.constant 0 : i32
    %c0_i32_3 = arith.constant 0 : i32
    return %c0_i32, %c0_i32_0, %c0_i32_1, %c0_i32_2 : i32, i32, i32, i32
  }
}

</mosaic_0001>

<bundles_post_ra>
// kernel: tpu_custom_call.1
= control target key start
LH: loop header
LB: loop body
LE: loop exit
PB: predicated region body
PF: predicated region fallthrough
CT: control target
= control target key end

     0   :  { %14 = vsyncpa [#allocation3], 0  ;;  %s1636_s0 = inlined_call_operand.hbm [shape: f32[2,8,32], index: 0, kind: input, shape index: {}]   ;;  %s1637_s1 = inlined_call_operand.hbm [shape: f32[32,128], index: 1, kind: input, shape index: {}]   ;;  %s1638_s2 = inlined_call_operand.vmem [shape: f32[1,128], index: 2, kind: input, shape index: {}]   ;;  %s1639_s3 = inlined_call_operand.hbm [shape: f32[2,8,8], index: 3, kind: input, shape index: {}]   ;;  %s1640_s4 = inlined_call_operand.hbm [shape: f32[16,64], index: 4, kind: input, shape index: {}]   ;;  %s1641_s5 = inlined_call_operand.vmem [shape: f32[16,64], index: 5, kind: input, shape index: {}]   ;;  %s1642_s6 = inlined_call_operand.hbm [shape: f32[16,64], index: 6, kind: input, shape index: {}]   ;;  %s1643_s7 = inlined_call_operand.hbm [shape: f32[2,8,32], index: 7, kind: output, shape index: {0}]   ;;  %s1644_s8 = inlined_call_operand.hbm [shape: f32[2,4,8,8], index: 8, kind: output, shape index: {1}]  }
   0x1   :  { %15 = vsyncpa [#allocation6], 0 }
   0x2   :  { %16 = vsyncpa [#allocation9], 0 }
   0x3   :  { %17 = vsyncpa [#allocation4], 0 }
   0x4   :  { %18 = vsyncpa [#allocation13], 0  ;;  %s1335_s27 = smov [#allocation5]   ;;  %s1336_s29 = smov [#allocation8]  }
   0x5   :  { %s36_s28 = sshll.u32 %s1335_s27, 4  ;;  %s62_s30 = sshll.u32 %s1336_s29, 4  ;;  %s37_s28 = int_to_ptr.vmem [resolvable:$true] %s36_s28  ;;  %s1400_s30 = int_to_ptr.vmem [resolvable:$true] %s62_s30 }
   0x6   :  { %s1171_s11 = scalar_lea.hbm %s1637_s1, 512 }
   0x7   :  { %p1172_p0 = scmp.ne.s32.totalorder %s1637_s1, %s1171_s11  ;;  %p1175_p1 = scmp.lt.u32.totalorder %s1171_s11, %s1637_s1 }
   0x9   :  { %p1177_p2 = pnand %p1175_p1, %p1172_p0 }
   0xb   :  { %1180 = shalt.err (!%p1177_p2)
}
   0xc   :  { %s1181_s16 = scalar_lea.vmem %s37_s28, 512  ;;  %p1186_p4 = scmp.lt.s32.totalorder %s37_s28, %s37_s28 }
   0xd   :  { %p1182_p3 = scmp.ne.s32.totalorder %s37_s28, %s1181_s16  ;;  %p1187_p5 = scmp.lt.s32.totalorder %s1181_s16, %s1181_s16 }
   0xf   :  { %p1188_p6 = por %p1187_p5, %p1186_p4 }
  0x11   :  { %p1189_p7 = pnand %p1188_p6, %p1182_p3 }
  0x13   :  { %1192 = shalt.err (!%p1189_p7)
}
  0x14   :  { %s1337_s17 = smov 128   ;;  %s1338_s18 = smov 8  }
  0x15   :  { %42 = dma.hbm_to_vmem [thread:$0]  %s1637_s1, 512, %s37_s28, [#allocation6], %s1337_s17, %s1337_s17, %s1338_s18  }
  0x16   :  { %s1193_s23 = scalar_lea.hbm %s1640_s4, 256 }
  0x17   :  { %p1194_p8 = scmp.ne.s32.totalorder %s1640_s4, %s1193_s23  ;;  %p1197_p9 = scmp.lt.u32.totalorder %s1193_s23, %s1640_s4 }
  0x19   :  { %p1199_p10 = pnand %p1197_p9, %p1194_p8 }
  0x1b   :  { %1202 = shalt.err (!%p1199_p10)
}
  0x1c   :  { %s1203_s29 = scalar_lea.vmem %s1400_s30, 256  ;;  %p1208_p12 = scmp.lt.s32.totalorder %s1400_s30, %s1400_s30 }
  0x1d   :  { %p1204_p11 = scmp.ne.s32.totalorder %s1400_s30, %s1203_s29  ;;  %p1209_p13 = scmp.lt.s32.totalorder %s1203_s29, %s1203_s29 }
  0x1f   :  { %p1210_p0 = por %p1209_p13, %p1208_p12 }
  0x21   :  { %p1211_p1 = pnand %p1210_p0, %p1204_p11 }
  0x23   :  { %1214 = shalt.err (!%p1211_p1)
}
  0x24   :  { %68 = dma.hbm_to_vmem [thread:$0]  %s1640_s4, 256, %s1400_s30, [#allocation9], %s1337_s17, %s1337_s17, %s1338_s18  }
  0x25   :  { %s1339_s9 = smov [#allocation2]   ;;  %s1340_s11 = smov [#allocation7]  }
  0x26   :  { %s24_s10 = sshll.u32 %s1339_s9, 4  ;;  %s50_s12 = sshll.u32 %s1340_s11, 4  ;;  %s25_s10 = int_to_ptr.vmem [resolvable:$true] %s24_s10  ;;  %s1437_s12 = int_to_ptr.vmem [resolvable:$true] %s50_s12 }
  0x27   :  { %s1215_s15 = scalar_lea.hbm %s1636_s0, 256 }
  0x28   :  { %p1216_p2 = scmp.ne.s32.totalorder %s1636_s0, %s1215_s15  ;;  %p1219_p3 = scmp.lt.u32.totalorder %s1215_s15, %s1636_s0 }
  0x2a   :  { %p1221_p4 = pnand %p1219_p3, %p1216_p2 }
  0x2c   :  { %1224 = shalt.err (!%p1221_p4)
}
  0x2d   :  { %s1225_s4 = scalar_lea.vmem %s25_s10, 256  ;;  %p1230_p6 = scmp.lt.s32.totalorder %s25_s10, %s25_s10 }
  0x2e   :  { %p1226_p5 = scmp.ne.s32.totalorder %s25_s10, %s1225_s4  ;;  %p1231_p7 = scmp.lt.s32.totalorder %s1225_s4, %s1225_s4 }
  0x30   :  { %p1232_p8 = por %p1231_p7, %p1230_p6 }
  0x32   :  { %p1233_p9 = pnand %p1232_p8, %p1226_p5 }
  0x34   :  { %1236 = shalt.err (!%p1233_p9)
}
  0x35   :  { %30 = dma.hbm_to_vmem [thread:$0]  %s1636_s0, 256, %s25_s10, [#allocation3], %s1337_s17, %s1337_s17, %s1338_s18  }
  0x36   :  { %s1237_s25 = scalar_lea.hbm %s1639_s3, 256 }
  0x37   :  { %p1238_p10 = scmp.ne.s32.totalorder %s1639_s3, %s1237_s25  ;;  %p1241_p11 = scmp.lt.u32.totalorder %s1237_s25, %s1639_s3 }
  0x39   :  { %p1243_p12 = pnand %p1241_p11, %p1238_p10 }
  0x3b   :  { %1246 = shalt.err (!%p1243_p12)
}
  0x3c   :  { %s1247_s28 = scalar_lea.vmem %s1437_s12, 256  ;;  %p1252_p0 = scmp.lt.s32.totalorder %s1437_s12, %s1437_s12 }
  0x3d   :  { %p1248_p13 = scmp.ne.s32.totalorder %s1437_s12, %s1247_s28  ;;  %p1253_p1 = scmp.lt.s32.totalorder %s1247_s28, %s1247_s28 }
  0x3f   :  { %p1254_p2 = por %p1253_p1, %p1252_p0 }
  0x41   :  { %p1255_p3 = pnand %p1254_p2, %p1248_p13 }
  0x43   :  { %1258 = shalt.err (!%p1255_p3)
}
  0x44   :  { %56 = dma.hbm_to_vmem [thread:$0]  %s1639_s3, 256, %s1437_s12, [#allocation6], %s1337_s17, %s1337_s17, %s1338_s18  }
  0x45   :  { %s1341_s10 = smov [#allocation10]   ;;  %s1259_s15 = scalar_lea.hbm %s1642_s6, 256 }
  0x46   :  { %s76_s11 = sshll.u32 %s1341_s10, 4  ;;  %p1260_p4 = scmp.ne.s32.totalorder %s1642_s6, %s1259_s15  ;;  %s77_s11 = int_to_ptr.vmem [resolvable:$true] %s76_s11 }
  0x47   :  { %p1263_p5 = scmp.lt.u32.totalorder %s1259_s15, %s1642_s6 }
  0x49   :  { %p1265_p6 = pnand %p1263_p5, %p1260_p4 }
  0x4b   :  { %1268 = shalt.err (!%p1265_p6)
}
  0x4c   :  { %s1269_s4 = scalar_lea.vmem %s77_s11, 256  ;;  %p1274_p8 = scmp.lt.s32.totalorder %s77_s11, %s77_s11 }
  0x4d   :  { %p1270_p7 = scmp.ne.s32.totalorder %s77_s11, %s1269_s4  ;;  %p1275_p9 = scmp.lt.s32.totalorder %s1269_s4, %s1269_s4 }
  0x4f   :  { %p1276_p10 = por %p1275_p9, %p1274_p8 }
  0x51   :  { %p1277_p11 = pnand %p1276_p10, %p1270_p7 }
  0x53   :  { %1280 = shalt.err (!%p1277_p11)
}
  0x54   :  { %82 = dma.hbm_to_vmem [thread:$0]  %s1642_s6, 256, %s77_s11, [#allocation9], %s1337_s17, %s1337_s17, %s1338_s18  }
  0x55   :  { %1325 = dma.done.wait [#allocation3], 256  }
  0x56   :  { %1326 = vsyncadd [#allocation3], 4294967040 }
  0x57   :  { %1327 = dma.done.wait [#allocation6], 768  }
  0x58   :  { %1328 = vsyncadd [#allocation6], 4294966528 }
  0x59   :  { %1329 = dma.done.wait [#allocation9], 512  }
  0x5a   :  { %1330 = vsyncadd [#allocation9], 4294966784  ;;  %vm111_vm0 = vcmask 261120   ;;  %v100_v0 = vld [vmem:[#allocation5] sm:$0xff]  ;;  %v101_v1 = vld [vmem:[#allocation5 + $0x8] sm:$0xff]  ;;  %s1342_s22 = smov 68  }
  0x5b   :  { %v102_v2 = vld [vmem:[#allocation5 + $0x10] sm:$0xff]  ;;  %v1111_v3 = vpack.c.bf16 %v101_v1, %v100_v0  ;;  %v103_v4 = vld [vmem:[#allocation5 + $0x18] sm:$0xff]  ;;  %s1343_s23 = smov 124   ;;  %s1344_s24 = smov 4   ;;  %vm230_vm1 = vcmask 31744   ;;  %vm215_vm2 = vcmask 490496  }
  0x5c   :  { %v98_v5 = vld [vmem:[#allocation2] sm:$0xff]  ;;  %v1115_v6 = vpack.c.bf16 %v103_v4, %v102_v2  ;;  %v99_v7 = vld [vmem:[#allocation2 + $0x8] sm:$0xff]  ;;  %s1345_s25 = smov 60   ;;  %v243_v19 = vld [vmem:[#allocation10] sm:$0xff]  ;;  %v1346_v31 = vmov 0.0   ;;  %s1348_s1 = smov 120  }
  0x5d   :  { %1068 = vmatprep.mubr.msk.f32.mxu0 %vm111_vm0, %v98_v5  ;;  %1112 = vmatprep.subr.bf16.mxu0 %v1111_v3  ;;  %v1019_v8 = vld [vmem:[%s1638_s2] ss:$0 sm:$0xff]  ;;  %v238_v24 = vld [vmem:[%s1641_s5 + $0x8] sm:$0xff]  ;;  %v244_v34 = vld [vmem:[#allocation10 + $0x8] sm:$0xff]  ;;  %vm1349_vm3 = vmmov 0   ;;  %s1350_s28 = smov 104  }
  0x5e   :  { %1114 = vmatpush3.bf16.msra.mxu0 %v1111_v3  ;;  %v233_v15 = vld [vmem:[#allocation8] sm:$0xff]  ;;  %v234_v29 = vld [vmem:[#allocation8 + $0x8] sm:$0xff]  ;;  %1071 = vmatprep.subr.mxu1 %v1346_v31  ;;  %s1351_s0 = smov 96   ;;  %vm265_vm4 = vcmask 64512   ;;  %v872_v56 = vld [vmem:[#allocation7] sm:$0xff]  ;;  %s1352_s9 = smov 32  }
  0x5f   :  { %1116 = vmatprep.subr.bf16.mxu0 %v1115_v6  ;;  %v237_v16 = vld [vmem:[%s1641_s5] sm:$0xff]  ;;  %s1347_s5 = smov 112   ;;  %1073 = vmatprep.mubr.msk.f32.mxu1 %vm1349_vm3, %v1346_v31  ;;  %vm874_vm5 = vcmp.ne.f32.partialorder %v872_v56, 0.0  ;;  %v873_v61 = vld [vmem:[#allocation7 + $0x8] sm:$0xff]  ;;  %s1353_s10 = smov [#allocation11]  }
  0x60   :  { %vm875_vm6 = vcmp.ne.f32.partialorder %v873_v61, 0.0  ;;  %s989_s11 = sshll.u32 %s1353_s10, 4  ;;  %s990_s11 = int_to_ptr.vmem [resolvable:$true] %s989_s11 }
  0x61   :  { %s1281_s13 = scalar_lea.vmem %s990_s11, 256  ;;  %p1286_p13 = scmp.lt.s32.totalorder %s990_s11, %s990_s11 }
  0x62   :  { %1118 = vmatpush3.bf16.msra.mxu0 %v1115_v6  ;;  %p1282_p12 = scmp.ne.s32.totalorder %s990_s11, %s1281_s13  ;;  %p1287_p0 = scmp.lt.s32.totalorder %s1281_s13, %s1281_s13 }
  0x63   :  { %1081 = vmatprep.subr.mxu0 %v1346_v31 }
  0x64   :  { %p1288_p1 = por %p1287_p0, %p1286_p13 }
  0x65   :  { %1069 = vmatmul.mubr.msk.f32.vlgmr.msra.gmra.mrb[0].mxu0 %vm111_vm0, %v99_v7 }
  0x66   :  { %1083 = vmatprep.mubr.msk.f32.mxu0 %vm1349_vm3, %v1346_v31  ;;  %p1289_p2 = pnand %p1288_p1, %p1282_p12 }
 0x138   :  { %v1070_v9 = vpop.f32.mrb[0].mxu0 }
 0x139   :  { %v184_v10 = vpop.f32.mrb[1].mxu0  ;;  %v1500_v12 = vadd.f32 %v1070_v9, %v1019_v8 }
 0x13a   :  { %v1494_v11 = vadd.f32 %v1019_v8, %v184_v10 }
 0x13b   :  { %v236_v35 = vmul.f32 %v234_v29, %v1500_v12 }
 0x13c   :  { %218 = vrot.lane.b32.xlu1 %v1494_v11, %s1342_s22  ;;  %203 = vrot.lane.b32.xlu0 %v1494_v11, %s1343_s23  ;;  %v235_v22 = vmul.f32 %v233_v15, %v1494_v11 }
 0x140   :  { %224 = vrot.lane.b32.xlu1 %v1494_v11, %s1344_s24  ;;  %209 = vrot.lane.b32.xlu0 %v1494_v11, %s1345_s25 }
 0x144   :  { %211 = vrot.lane.b32.xlu1 %v1500_v12, %s1345_s25  ;;  %205 = vrot.lane.b32.xlu0 %v1500_v12, %s1343_s23 }
 0x148   :  { %226 = vrot.lane.b32.xlu1 %v1500_v12, %s1344_s24  ;;  %220 = vrot.lane.b32.xlu0 %v1500_v12, %s1342_s22 }
 0x1ae   :  { %v219_v13 = vpop.permute.xlu1 %218  ;;  %v204_v14 = vpop.permute.xlu0 %203 }
 0x1b2   :  { %v225_v17 = vpop.permute.xlu1 %224  ;;  %v210_v18 = vpop.permute.xlu0 %209 }
 0x1b3   :  { %v231_v20 = vsel %vm230_vm1, %v219_v13, %v225_v17  ;;  %v216_v21 = vsel %vm215_vm2, %v204_v14, %v210_v18 }
 0x1b4   :  { %v239_v23 = vmul.f32 %v237_v16, %v216_v21  ;;  %v245_v25 = vmul.f32 %v243_v19, %v231_v20 }
 0x1b6   :  { %v241_v26 = vadd.f32 %v239_v23, %v235_v22  ;;  %v212_v27 = vpop.permute.xlu1 %211  ;;  %v206_v28 = vpop.permute.xlu0 %205 }
 0x1b7   :  { %v217_v30 = vsel %vm215_vm2, %v206_v28, %v212_v27 }
 0x1b8   :  { %v247_v32 = vadd.f32 %v245_v25, %v241_v26  ;;  %v240_v33 = vmul.f32 %v238_v24, %v217_v30 }
 0x1ba   :  { %v227_v36 = vpop.permute.xlu1 %226  ;;  %v221_v37 = vpop.permute.xlu0 %220  ;;  %255 = vrot.lane.b32.xlu1 %v247_v32, %s1347_s5  ;;  %251 = vrot.lane.b32.xlu0 %v247_v32, %s1348_s1  ;;  %v242_v39 = vadd.f32 %v240_v33, %v236_v35 }
 0x1bb   :  { %v232_v38 = vsel %vm230_vm1, %v221_v37, %v227_v36 }
 0x1bc   :  { %v246_v40 = vmul.f32 %v244_v34, %v232_v38 }
 0x1be   :  { %v248_v41 = vadd.f32 %v246_v40, %v242_v39  ;;  %259 = vrot.lane.b32.xlu0 %v247_v32, %s1350_s28 }
 0x1c0   :  { %253 = vrot.lane.b32.xlu1 %v248_v41, %s1348_s1 }
 0x1c2   :  { %257 = vrot.lane.b32.xlu0 %v248_v41, %s1347_s5 }
 0x1c4   :  { %261 = vrot.lane.b32.xlu1 %v248_v41, %s1350_s28 }
 0x1c6   :  { %263 = vrot.lane.b32.xlu0 %v247_v32, %s1351_s0 }
 0x22c   :  { %v256_v42 = vpop.permute.xlu1 %255  ;;  %v252_v43 = vpop.permute.xlu0 %251 }
 0x22d   :  { %416 = vrot.lane.b32.xlu0 %v256_v42, %s1351_s0  ;;  %340 = vrot.lane.b32.xlu1 %v252_v43, %s1351_s0 }
 0x230   :  { %v260_v44 = vpop.permute.xlu0 %259 }
 0x231   :  { %568 = vrot.lane.b32.xlu0 %v248_v41, %s1351_s0  ;;  %492 = vrot.lane.b32.xlu1 %v260_v44, %s1351_s0 }
 0x232   :  { %v254_v45 = vpop.permute.xlu1 %253 }
 0x234   :  { %v258_v46 = vpop.permute.xlu0 %257 }
 0x235   :  { %644 = vrot.lane.b32.xlu1 %v254_v45, %s1351_s0  ;;  %720 = vrot.lane.b32.xlu0 %v258_v46, %s1351_s0 }
 0x236   :  { %v262_v47 = vpop.permute.xlu1 %261 }
 0x238   :  { %v264_v48 = vpop.permute.xlu0 %263 }
 0x239   :  { %796 = vrot.lane.b32.xlu1 %v262_v47, %s1351_s0  ;;  %1072 = vmatpush3.xpose.msk.msra.mxu1 %vm265_vm4, %v264_v48 }
 0x23a   :  { %1076 = vmatprep.subr.mxu1 %v1346_v31 }
 0x23c   :  { %1074 = vmatmul.mubr.msk.f32.vlgmr.msra.gmra.mrb[0].mxu1 %vm265_vm4, %v247_v32 }
 0x23d   :  { %1078 = vmatprep.mubr.msk.f32.mxu1 %vm1349_vm3, %v1346_v31 }
 0x29f   :  { %v341_v49 = vpop.permute.xlu1 %340  ;;  %v417_v50 = vpop.permute.xlu0 %416 }
 0x2a0   :  { %1077 = vmatpush3.xpose.msk.msra.mxu1 %vm265_vm4, %v341_v49  ;;  %1082 = vmatpush3.xpose.msk.msra.mxu0 %vm265_vm4, %v417_v50 }
 0x2a1   :  { %1086 = vmatprep.subr.mxu1 %v1346_v31  ;;  %1091 = vmatprep.subr.mxu0 %v1346_v31 }
 0x2a3   :  { %v493_v51 = vpop.permute.xlu1 %492  ;;  %1079 = vmatmul.mubr.msk.f32.vlgmr.msra.gmra.mrb[2].mxu1 %vm265_vm4, %v252_v43  ;;  %1084 = vmatmul.mubr.msk.f32.vlgmr.msra.gmra.mrb[2].mxu0 %vm265_vm4, %v256_v42  ;;  %v569_v52 = vpop.permute.xlu0 %568 }
 0x2a4   :  { %1087 = vmatpush3.xpose.msk.msra.mxu1 %vm265_vm4, %v493_v51  ;;  %1092 = vmatpush3.xpose.msk.msra.mxu0 %vm265_vm4, %v569_v52 }
 0x2a5   :  { %1088 = vmatprep.mubr.msk.f32.mxu1 %vm1349_vm3, %v1346_v31  ;;  %1093 = vmatprep.mubr.msk.f32.mxu0 %vm1349_vm3, %v1346_v31 }
 0x2a6   :  { %1096 = vmatprep.subr.mxu1 %v1346_v31  ;;  %1101 = vmatprep.subr.mxu0 %v1346_v31 }
 0x2a7   :  { %v645_v53 = vpop.permute.xlu1 %644  ;;  %1089 = vmatmul.mubr.msk.f32.vlgmr.msra.gmra.mrb[4].mxu1 %vm265_vm4, %v260_v44  ;;  %1094 = vmatmul.mubr.msk.f32.vlgmr.msra.gmra.mrb[4].mxu0 %vm265_vm4, %v248_v41  ;;  %v721_v54 = vpop.permute.xlu0 %720 }
 0x2a8   :  { %1097 = vmatpush3.xpose.msk.msra.mxu1 %vm265_vm4, %v645_v53  ;;  %1102 = vmatpush3.xpose.msk.msra.mxu0 %vm265_vm4, %v721_v54 }
 0x2a9   :  { %1098 = vmatprep.mubr.msk.f32.mxu1 %vm1349_vm3, %v1346_v31  ;;  %1103 = vmatprep.mubr.msk.f32.mxu0 %vm1349_vm3, %v1346_v31 }
 0x2aa   :  { %1106 = vmatprep.subr.mxu1 %v1346_v31 }
 0x2ab   :  { %v797_v55 = vpop.permute.xlu1 %796  ;;  %1099 = vmatmul.mubr.msk.f32.vlgmr.msra.gmra.mrb[6].mxu1 %vm265_vm4, %v254_v45  ;;  %1104 = vmatmul.mubr.msk.f32.vlgmr.msra.gmra.mrb[6].mxu0 %vm265_vm4, %v258_v46 }
 0x2ac   :  { %1107 = vmatpush3.xpose.msk.msra.mxu1 %vm265_vm4, %v797_v55  ;;  %1108 = vmatprep.mubr.msk.f32.mxu1 %vm1349_vm3, %v1346_v31 }
 0x2af   :  { %1109 = vmatmul.mubr.msk.f32.vlgmr.msra.gmra.mrb[8].mxu1 %vm265_vm4, %v262_v47 }
 0x30f   :  { %v336_v57 = vpop.f32.mrb[0].mxu1 }
 0x310   :  { %v880_v58 = vsel %vm874_vm5, %v336_v57, -1000000.0  ;;  %v1075_v59 = vpop.f32.mrb[1].mxu1 }
 0x311   :  { %v888_v60 = vsel %vm265_vm4, %v880_v58, -inf }
 0x312   :  { %889 = vmax.xlane.f32.xlu0 %v888_v60 }
 0x376   :  { %v412_v62 = vpop.f32.mrb[2].mxu1  ;;  %v488_v63 = vpop.f32.mrb[2].mxu0 }
 0x377   :  { %v881_v0 = vsel %vm874_vm5, %v412_v62, -1000000.0  ;;  %v882_v1 = vsel %vm874_vm5, %v488_v63, -1000000.0  ;;  %v1080_v2 = vpop.f32.mrb[3].mxu1  ;;  %v1085_v3 = vpop.f32.mrb[3].mxu0 }
 0x378   :  { %v891_v4 = vsel %vm265_vm4, %v881_v0, -inf  ;;  %v894_v5 = vsel %vm265_vm4, %v882_v1, -inf }
 0x379   :  { %892 = vmax.xlane.f32.xlu1 %v891_v4  ;;  %895 = vmax.xlane.f32.xlu0 %v894_v5 }
 0x37a   :  { %v564_v6 = vpop.f32.mrb[4].mxu1  ;;  %v640_v7 = vpop.f32.mrb[4].mxu0 }
 0x37b   :  { %v883_v8 = vsel %vm874_vm5, %v564_v6, -1000000.0  ;;  %v884_v9 = vsel %vm875_vm6, %v640_v7, -1000000.0  ;;  %v1090_v10 = vpop.f32.mrb[5].mxu1  ;;  %v1095_v13 = vpop.f32.mrb[5].mxu0 }
 0x37c   :  { %v897_v14 = vsel %vm265_vm4, %v883_v8, -inf  ;;  %v900_v15 = vsel %vm265_vm4, %v884_v9, -inf }
 0x37d   :  { %898 = vmax.xlane.f32.xlu0 %v897_v14  ;;  %901 = vmax.xlane.f32.xlu1 %v900_v15 }
 0x37e   :  { %v716_v16 = vpop.f32.mrb[6].mxu1  ;;  %v792_v17 = vpop.f32.mrb[6].mxu0 }
 0x37f   :  { %v885_v18 = vsel %vm875_vm6, %v716_v16, -1000000.0  ;;  %v886_v19 = vsel %vm875_vm6, %v792_v17, -1000000.0  ;;  %v1100_v20 = vpop.f32.mrb[7].mxu1  ;;  %v1105_v21 = vpop.f32.mrb[7].mxu0 }
 0x380   :  { %v903_v22 = vsel %vm265_vm4, %v885_v18, -inf  ;;  %v906_v23 = vsel %vm265_vm4, %v886_v19, -inf }
 0x381   :  { %904 = vmax.xlane.f32.xlu0 %v903_v22  ;;  %907 = vmax.xlane.f32.xlu1 %v906_v23 }
 0x382   :  { %v868_v24 = vpop.f32.mrb[8].mxu1 }
 0x383   :  { %v887_v25 = vsel %vm875_vm6, %v868_v24, -1000000.0  ;;  %v1110_v26 = vpop.f32.mrb[9].mxu1 }
 0x384   :  { %v909_v27 = vsel %vm265_vm4, %v887_v25, -inf }
 0x385   :  { %910 = vmax.xlane.f32.xlu0 %v909_v27 }
 0x39f   :  { %v890_v28 = vpop.xlane.xlu0 %889 }
 0x3a0   :  { %v912_v29 = vsub.f32 %v880_v58, %v890_v28 }
 0x3a2   :  { %v920_v30 = vmul.f32 1.442695, %v912_v29 }
 0x3a4   :  { %1139 = vpow2.f32 %v920_v30 }
 0x3ae   :  { %v1140_v31 = vpop.eup %1139 }
 0x3af   :  { %v936_v32 = vsel %vm265_vm4, %v1140_v31, 0.0 }
 0x3b0   :  { %937 = vadd.xlane.f32.xlu1 %v936_v32 }
 0x406   :  { %v893_v33 = vpop.xlane.xlu1 %892  ;;  %v896_v34 = vpop.xlane.xlu0 %895 }
 0x407   :  { %v913_v35 = vsub.f32 %v881_v0, %v893_v33  ;;  %v914_v36 = vsub.f32 %v882_v1, %v896_v34 }
 0x409   :  { %v922_v37 = vmul.f32 1.442695, %v913_v35  ;;  %v924_v38 = vmul.f32 1.442695, %v914_v36 }
 0x40a   :  { %v902_v39 = vpop.xlane.xlu1 %901  ;;  %v899_v40 = vpop.xlane.xlu0 %898 }
 0x40b   :  { %1141 = vpow2.f32 %v922_v37  ;;  %v916_v41 = vsub.f32 %v884_v9, %v902_v39  ;;  %v915_v42 = vsub.f32 %v883_v8, %v899_v40 }
 0x40c   :  { %1143 = vpow2.f32 %v924_v38 }
 0x40d   :  { %v928_v43 = vmul.f32 1.442695, %v916_v41  ;;  %v926_v44 = vmul.f32 1.442695, %v915_v42 }
 0x40e   :  { %v908_v45 = vpop.xlane.xlu1 %907  ;;  %v905_v46 = vpop.xlane.xlu0 %904 }
 0x40f   :  { %1145 = vpow2.f32 %v928_v43  ;;  %v918_v47 = vsub.f32 %v886_v19, %v908_v45  ;;  %v917_v48 = vsub.f32 %v885_v18, %v905_v46 }
 0x410   :  { %1147 = vpow2.f32 %v926_v44 }
 0x411   :  { %v932_v49 = vmul.f32 1.442695, %v918_v47  ;;  %v930_v50 = vmul.f32 1.442695, %v917_v48 }
 0x412   :  { %v911_v51 = vpop.xlane.xlu0 %910 }
 0x413   :  { %1149 = vpow2.f32 %v932_v49  ;;  %v919_v52 = vsub.f32 %v887_v25, %v911_v51 }
 0x414   :  { %1151 = vpow2.f32 %v930_v50 }
 0x415   :  { %v1142_v53 = vpop.eup %1141  ;;  %v934_v54 = vmul.f32 1.442695, %v919_v52 }
 0x416   :  { %v1144_v55 = vpop.eup %1143  ;;  %v939_v56 = vsel %vm265_vm4, %v1142_v53, 0.0 }
 0x417   :  { %1153 = vpow2.f32 %v934_v54  ;;  %940 = vadd.xlane.f32.xlu0 %v939_v56  ;;  %v942_v57 = vsel %vm265_vm4, %v1144_v55, 0.0 }
 0x418   :  { %943 = vadd.xlane.f32.xlu1 %v942_v57 }
 0x419   :  { %v1146_v58 = vpop.eup %1145 }
 0x41a   :  { %v1148_v59 = vpop.eup %1147  ;;  %v948_v60 = vsel %vm265_vm4, %v1146_v58, 0.0 }
 0x41b   :  { %v945_v61 = vsel %vm265_vm4, %v1148_v59, 0.0 }
 0x41c   :  { %949 = vadd.xlane.f32.xlu1 %v948_v60  ;;  %946 = vadd.xlane.f32.xlu0 %v945_v61 }
 0x41d   :  { %v1579_v62 = vpop.eup %1149 }
 0x41e   :  { %v1581_v63 = vpop.eup %1151  ;;  %v954_v0 = vsel %vm265_vm4, %v1579_v62, 0.0 }
 0x41f   :  { %v951_v1 = vsel %vm265_vm4, %v1581_v63, 0.0 }
 0x420   :  { %955 = vadd.xlane.f32.xlu1 %v954_v0  ;;  %952 = vadd.xlane.f32.xlu0 %v951_v1 }
 0x421   :  { %v1587_v2 = vpop.eup %1153 }
 0x422   :  { %v957_v3 = vsel %vm265_vm4, %v1587_v2, 0.0 }
 0x424   :  { %958 = vadd.xlane.f32.xlu0 %v957_v3 }
 0x431   :  { %195 = vrot.lane.b32.xlu1 %v1494_v11, %s1352_s9 }
 0x43a   :  { %197 = vrot.lane.b32.xlu0 %v1500_v12, %s1352_s9 }
 0x43d   :  { %v938_v4 = vpop.xlane.xlu1 %937 }
 0x43e   :  { %1155 = vrcp.f32 %v938_v4 }
 0x448   :  { %v1156_v5 = vpop.eup %1155 }
 0x449   :  { %v968_v6 = vmul.f32 %v1156_v5, %v1140_v31 }
 0x44b   :  { %976 = vst.msk [vmem:[#allocation12] sm:$0xff] %vm265_vm4, %v968_v6 }
 0x4a4   :  { %v941_v7 = vpop.xlane.xlu0 %940 }
 0x4a5   :  { %v944_v8 = vpop.xlane.xlu1 %943  ;;  %1157 = vrcp.f32 %v941_v7 }
 0x4a6   :  { %1159 = vrcp.f32 %v944_v8 }
 0x4a9   :  { %v950_v9 = vpop.xlane.xlu1 %949  ;;  %v947_v10 = vpop.xlane.xlu0 %946 }
 0x4aa   :  { %1161 = vrcp.f32 %v950_v9 }
 0x4ab   :  { %1163 = vrcp.f32 %v947_v10 }
 0x4ad   :  { %v956_v13 = vpop.xlane.xlu1 %955  ;;  %v953_v14 = vpop.xlane.xlu0 %952 }
 0x4ae   :  { %1165 = vrcp.f32 %v956_v13 }
 0x4af   :  { %v1158_v11 = vpop.eup %1157  ;;  %1167 = vrcp.f32 %v953_v14 }
 0x4b0   :  { %v1160_v12 = vpop.eup %1159  ;;  %v969_v15 = vmul.f32 %v1158_v11, %v1142_v53 }
 0x4b1   :  { %v970_v16 = vmul.f32 %v1160_v12, %v1144_v55  ;;  %v196_v17 = vpop.permute.xlu1 %195  ;;  %v959_v18 = vpop.xlane.xlu0 %958 }
 0x4b2   :  { %977 = vst.msk [vmem:[#allocation12 + $0x8] sm:$0xff] %vm265_vm4, %v969_v15  ;;  %1169 = vrcp.f32 %v959_v18 }
 0x4b3   :  { %201 = vst.msk [vmem:[#allocation11] sm:$0xff] %vm111_vm0, %v196_v17 }
 0x4b4   :  { %978 = vst.msk [vmem:[#allocation12 + $0x10] sm:$0xff] %vm265_vm4, %v970_v16  ;;  %v1162_v19 = vpop.eup %1161 }
 0x4b5   :  { %v1164_v20 = vpop.eup %1163  ;;  %v972_v21 = vmul.f32 %v1162_v19, %v1146_v58  ;;  %v198_v22 = vpop.permute.xlu0 %197 }
 0x4b6   :  { %v971_v23 = vmul.f32 %v1164_v20, %v1148_v59  ;;  %202 = vst.msk [vmem:[#allocation11 + $0x8] sm:$0xff] %vm111_vm0, %v198_v22 }
 0x4b7   :  { %980 = vst.msk [vmem:[#allocation12 + $0x20] sm:$0xff] %vm265_vm4, %v972_v21 }
 0x4b8   :  { %1292 = shalt.err (!%p1289_p2)
}
 0x4b9   :  { %s1293_s16 = scalar_lea.hbm %s1643_s7, 256 }
 0x4ba   :  { %p1294_p3 = scmp.ne.s32.totalorder %s1643_s7, %s1293_s16  ;;  %p1297_p4 = scmp.lt.u32.totalorder %s1293_s16, %s1643_s7 }
 0x4bc   :  { %p1299_p5 = pnand %p1297_p4, %p1294_p3 }
 0x4be   :  { %1302 = shalt.err (!%p1299_p5)
}
 0x4bf   :  { %995 = dma.vmem_to_hbm [thread:$0]  %s990_s11, 256, %s1643_s7, [#allocation4], %s1337_s17, %s1337_s17, %s1338_s18   ;;  %v1166_v24 = vpop.eup %1165  ;;  %979 = vst.msk [vmem:[#allocation12 + $0x18] sm:$0xff] %vm265_vm4, %v971_v23 }
 0x4c0   :  { %v1168_v25 = vpop.eup %1167  ;;  %v974_v26 = vmul.f32 %v1166_v24, %v1579_v62  ;;  %s1354_s6 = smov [#allocation12]  }
 0x4c1   :  { %v973_v27 = vmul.f32 %v1168_v25, %v1581_v63  ;;  %s1001_s30 = sshll.u32 %s1354_s6, 4  ;;  %v1170_v28 = vpop.eup %1169  ;;  %s1002_s30 = int_to_ptr.vmem [resolvable:$true] %s1001_s30 }
 0x4c2   :  { %982 = vst.msk [vmem:[#allocation12 + $0x30] sm:$0xff] %vm265_vm4, %v974_v26  ;;  %v975_v29 = vmul.f32 %v1170_v28, %v1587_v2  ;;  %s1303_s7 = scalar_lea.vmem %s1002_s30, 1024  ;;  %p1308_p7 = scmp.lt.s32.totalorder %s1002_s30, %s1002_s30 }
 0x4c3   :  { %981 = vst.msk [vmem:[#allocation12 + $0x28] sm:$0xff] %vm265_vm4, %v973_v27  ;;  %p1304_p6 = scmp.ne.s32.totalorder %s1002_s30, %s1303_s7  ;;  %p1309_p8 = scmp.lt.s32.totalorder %s1303_s7, %s1303_s7 }
 0x4c4   :  { %983 = vst.msk [vmem:[#allocation12 + $0x38] sm:$0xff] %vm265_vm4, %v975_v29 }
 0x4c5   :  { %p1310_p9 = por %p1309_p8, %p1308_p7 }
 0x4c7   :  { %p1311_p10 = pnand %p1310_p9, %p1304_p6 }
 0x4c9   :  { %1314 = shalt.err (!%p1311_p10)
}
 0x4ca   :  { %s1315_s24 = scalar_lea.hbm %s1644_s8, 1024 }
 0x4cb   :  { %p1316_p11 = scmp.ne.s32.totalorder %s1644_s8, %s1315_s24  ;;  %p1319_p12 = scmp.lt.u32.totalorder %s1315_s24, %s1644_s8 }
 0x4cd   :  { %p1321_p13 = pnand %p1319_p12, %p1316_p11 }
 0x4cf   :  { %1324 = shalt.err (!%p1321_p13)
}
 0x4d0   :  { %1007 = dma.vmem_to_hbm [thread:$0]  %s1002_s30, 1024, %s1644_s8, [#allocation13], %s1337_s17, %s1337_s17, %s1338_s18  }
 0x4d1   :  { %1331 = dma.done.wait [#allocation4], 256  }
 0x4d2   :  { %1332 = vsyncadd [#allocation4], 4294967040 }
 0x4d3   :  { %1333 = dma.done.wait [#allocation13], 1024  }
 0x4d4   :  { %1334 = vsyncadd [#allocation13], 4294966272 }
 0x4d5   :  { %1014 = vsyncpa [#allocation3], 1 }
 0x4d6   :  { %1015 = vsyncpa [#allocation6], 1 }
 0x4d7   :  { %1016 = vsyncpa [#allocation9], 1 }
 0x4d8   :  { %1017 = vsyncpa [#allocation4], 1 }
 0x4d9   :  { %1018 = vsyncpa [#allocation13], 1 }

</bundles_post_ra>
